<compile_context>
chip_gen: v7x
topology: tpu7x:2x2x1
jax: 0.10.0
libtpu: 0.0.40
codegen_flags: <defaults>
</compile_context>

<pallas_src>
import math
import numpy as np
import jax
import jax.numpy as jnp
from jax.experimental import pallas as pl
from jax.experimental.pallas import tpu as pltpu


# -----------------------------------------------------------------------------
# Hardware-aware defaults
# -----------------------------------------------------------------------------
def _default_compute_dtype():
    """bf16 operands on v6e/v7x (2x MXU rate, half the x/W HBM traffic); f32 elsewhere."""
    try:
        kind = jax.devices()[0].device_kind.lower()
    except Exception:
        return jnp.float32
    for tag in ("v6", "v7", "tpu7", "trillium"):
        if tag in kind:
            return jnp.bfloat16
    return jnp.float32


def _vmem_limit_cap_bytes():
    """Generation-aware cap for vmem_limit_bytes (leave headroom under physical VMEM)."""
    cap = None
    try:
        cap = int(getattr(pltpu.get_tpu_info(), "vmem_capacity_bytes"))
    except Exception:
        cap = None
    if cap is None:
        try:
            kind = jax.devices()[0].device_kind.lower()
        except Exception:
            kind = ""
        cap = (64 << 20) if "7" in kind else (128 << 20)
    if cap <= (64 << 20):
        return 42 << 20          # v7x: 64 MiB per TensorCore
    return 96 << 20              # v5e / v6e: 128 MiB


# -----------------------------------------------------------------------------
# Kernel bodies (specialized per routing mode and per weight-slab form so the
# unused routing tensor is never DMA'd and no unnecessary intermediate is built)
# -----------------------------------------------------------------------------
def _make_hard_stacked_kernel(G, O, T):
    """Hard routing, gate applied on the f32 output of one (G*O, Cp)x(Cp, T) matmul."""

    def kernel(x_ref, w_ref, mask_ref, bias_ref, o_ref):
        y = jnp.dot(w_ref[0], x_ref[0], preferred_element_type=jnp.float32)  # (G*O, T) f32
        y = y.reshape(G, O, T)          # free relayout when O % 8 == 0 (perf-only otherwise)
        m = mask_ref[0]                                                       # (1, T) int32
        gid = jax.lax.broadcasted_iota(jnp.int32, (G, T), 0)
        coef = (gid == m).astype(jnp.float32)                                 # (G, T) one-hot
        out = jnp.sum(coef[:, None, :] * y, axis=0)                           # (O, T) f32 gate
        o_ref[0] = (out + bias_ref[0]).astype(o_ref.dtype)

    return kernel


def _make_soft_stacked_kernel(G, O, T, beta):
    """Soft routing, beta*Alpha mixture applied in f32 on the matmul output."""

    def kernel(x_ref, w_ref, alpha_ref, bias_ref, o_ref):
        y = jnp.dot(w_ref[0], x_ref[0], preferred_element_type=jnp.float32)  # (G*O, T) f32
        y = y.reshape(G, O, T)
        coef = beta * alpha_ref[0].astype(jnp.float32)                        # (G, T) f32
        out = jnp.sum(coef[:, None, :] * y, axis=0)                           # (O, T)
        o_ref[0] = (out + bias_ref[0]).astype(o_ref.dtype)

    return kernel


def _make_hard_folded_kernel(G, Cp, O, T):
    """Hard routing folded into the contraction dimension (used when Cp < O)."""

    def kernel(x_ref, w_ref, mask_ref, bias_ref, o_ref):
        x = x_ref[0]                                                          # (Cp, T)
        m = mask_ref[0]                                                       # (1, T) int32
        gid = jax.lax.broadcasted_iota(jnp.int32, (G, T), 0)
        coef = (gid == m).astype(x.dtype)                                     # (G, T) one-hot
        z = (coef[:, None, :] * x[None, :, :]).reshape(G * Cp, T)             # (G*Cp, T)
        acc = jnp.dot(w_ref[0], z, preferred_element_type=jnp.float32)        # one MXU matmul
        o_ref[0] = (acc + bias_ref[0]).astype(o_ref.dtype)

    return kernel


def _make_soft_folded_kernel(G, Cp, O, T, beta):
    """Soft routing folded into the contraction dimension (used when Cp < O)."""

    def kernel(x_ref, w_ref, alpha_ref, bias_ref, o_ref):
        x = x_ref[0]
        coef = (beta * alpha_ref[0].astype(jnp.float32)).astype(x.dtype)      # (G, T)
        z = (coef[:, None, :] * x[None, :, :]).reshape(G * Cp, T)
        acc = jnp.dot(w_ref[0], z, preferred_element_type=jnp.float32)
        o_ref[0] = (acc + bias_ref[0]).astype(o_ref.dtype)

    return kernel


# -----------------------------------------------------------------------------
# Pallas wrapper
# -----------------------------------------------------------------------------
def _choose_hw_tile(hw_padded, per_col_bytes, budget_bytes, min_hw_steps=1):
    """Largest lane tile (multiple of 128, divides hw_padded) within the stream budget,
    optionally forcing >= min_hw_steps tiles along HW (v7x 2-TC utilisation)."""
    max_tile = max(128, (budget_bytes // max(per_col_bytes, 1)) // 128 * 128)
    tile = min(hw_padded, max_tile)
    if min_hw_steps > 1:
        tile = min(tile, max(128, (hw_padded // min_hw_steps) // 128 * 128))
    tile = max(tile, 128)
    while hw_padded % tile:
        tile -= 128
    return max(tile, 128)


def drconv_deformable_matmul(x_flat, w_bgoc, route_flat, bias, use_alpha, beta,
                             compute_dtype=jnp.float32, out_dtype=jnp.float32,
                             form="auto"):
    """out[b,o,p] = sum_{g,c} W[b,g,o,c] * coef[b,g,p] * x[b,c,p]  (+ bias[o]).

    route_flat is the ONLY routing tensor streamed: mask (B,1,HW) int32 when
    use_alpha=False, Alpha (B,G,HW) f32 when use_alpha=True.
    """
    B, C, HW = x_flat.shape
    _, G, O, _ = w_bgoc.shape
    itemsize = jnp.dtype(compute_dtype).itemsize
    out_itemsize = jnp.dtype(out_dtype).itemsize

    # Pad C_unf to the compute-dtype sublane multiple (8 f32 / 16 bf16) so the
    # (G, Cp, T)->(G*Cp, T) reshape is a free relayout and K is tile-aligned.
    sub = 8 * (4 // itemsize)
    Cp = ((C + sub - 1) // sub) * sub
    pad_c = Cp - C

    # Pad the pixel axis to a multiple of 128 so every tile is lane-dense (unmasked vst).
    HWp = ((HW + 127) // 128) * 128
    pad_hw = HWp - HW

    if pad_c:
        x_flat = jnp.pad(x_flat, ((0, 0), (0, pad_c), (0, 0)))
        w_bgoc = jnp.pad(w_bgoc, ((0, 0), (0, 0), (0, 0), (0, pad_c)))
    if pad_hw:
        x_flat = jnp.pad(x_flat, ((0, 0), (0, 0), (0, pad_hw)))
        route_flat = jnp.pad(route_flat, ((0, 0), (0, 0), (0, pad_hw)))

    x_flat = x_flat.astype(compute_dtype)

    if form == "auto":
        # stacked (gate-on-output) when O <= Cp: smaller intermediate, M = G*O MXU fill.
        form = "stacked" if O <= Cp else "folded"

    if form == "stacked":
        # w_slab[b, g*O + o, c] = W[b, g, o, c]  -> one matmul with M = G*O, K = Cp.
        w_slab = w_bgoc.reshape(B, G * O, Cp).astype(compute_dtype)
        inter_bytes = 2 * G * O * 4 + G * 4            # Y(f32) + gated product temp + coef
        w_block = (1, G * O, Cp)
    else:
        # w_slab[b, o, g*Cp + c] = W[b, g, o, c]  -> one matmul with M = O, K = G*Cp.
        w_slab = jnp.transpose(w_bgoc, (0, 2, 1, 3)).reshape(B, O, G * Cp).astype(compute_dtype)
        inter_bytes = 2 * G * Cp * itemsize + G * 4    # z + (G,Cp,T) broadcast temp + coef
        w_block = (1, O, G * Cp)

    route_row_bytes = (G * 4) if use_alpha else 4
    # Per-column-of-T VMEM footprint: double-buffered streams + the kernel intermediate.
    per_col = (2 * Cp * itemsize            # x tile
               + 2 * route_row_bytes        # routing tile
               + 2 * O * out_itemsize       # output tile
               + inter_bytes)               # Y / z intermediate (previously uncounted)

    limit_cap = _vmem_limit_cap_bytes()
    headroom = 4 << 20
    resident = 2 * (G * O * Cp * itemsize + O * 4)     # weight slab (double-buffered) + bias
    stream_budget = max(limit_cap - resident - headroom, 2 << 20)
    min_hw_steps = 2 if (B == 1 and HWp >= 256) else 1  # keep both v7x TCs busy when B == 1
    T = _choose_hw_tile(HWp, per_col, stream_budget, min_hw_steps)
    n_t = HWp // T

    needed = per_col * T + resident + headroom
    vmem_limit = int(max(needed, 16 << 20))
    if vmem_limit <= limit_cap:
        vmem_limit = int(min(vmem_limit, limit_cap))
    else:
        vmem_limit = int(needed)   # declare actual need; compiler errors clearly if impossible

    bias3 = (bias if bias is not None else jnp.zeros((O,), jnp.float32))
    bias3 = bias3.astype(jnp.float32).reshape(1, O, 1)

    x_spec = pl.BlockSpec((1, Cp, T), lambda b, t: (b, 0, t))
    w_spec = pl.BlockSpec(w_block, lambda b, t: (b, 0, 0))        # resident across HW tiles
    bias_spec = pl.BlockSpec((1, O, 1), lambda b, t: (0, 0, 0))   # resident everywhere
    o_spec = pl.BlockSpec((1, O, T), lambda b, t: (b, 0, t))

    if use_alpha:
        route = route_flat.astype(jnp.float32)                    # gate stays f32 (accuracy, v5e VPU)
        route_spec = pl.BlockSpec((1, G, T), lambda b, t: (b, 0, t))
        kernel = (_make_soft_stacked_kernel(G, O, T, float(beta)) if form == "stacked"
                  else _make_soft_folded_kernel(G, Cp, O, T, float(beta)))
    else:
        route = route_flat.astype(jnp.int32)
        route_spec = pl.BlockSpec((1, 1, T), lambda b, t: (b, 0, t))
        kernel = (_make_hard_stacked_kernel(G, O, T) if form == "stacked"
                  else _make_hard_folded_kernel(G, Cp, O, T))

    # Advisory cost estimate so XLA can overlap the surrounding glue ops with the kernel.
    cost = pl.CostEstimate(
        flops=2 * B * O * G * Cp * HWp,
        transcendentals=0,
        bytes_accessed=(B * Cp * HWp * itemsize + B * O * G * Cp * itemsize
                        + B * HWp * route_row_bytes + B * O * HWp * out_itemsize),
    )

    # NOTE: if profiling shows exposed DMA once MXU-bound, x_spec/route_spec can take
    # pipeline_mode=pl.Buffered(3) at the cost of one more T-column of VMEM (sweep).
    out = pl.pallas_call(
        kernel,
        out_shape=jax.ShapeDtypeStruct((B, O, HWp), out_dtype),
        grid_spec=pltpu.PrefetchScalarGridSpec(
            num_scalar_prefetch=0,
            grid=(B, n_t),
            in_specs=[x_spec, w_spec, route_spec, bias_spec],
            out_specs=o_spec,
        ),
        compiler_params=pltpu.CompilerParams(
            dimension_semantics=("parallel", "parallel"),
            vmem_limit_bytes=vmem_limit,
        ),
        cost_estimate=cost,
    )(x_flat, w_slab, route, bias3)

    if pad_hw:
        out = out[:, :, :HW]
    return out


# -----------------------------------------------------------------------------
# Module port
# -----------------------------------------------------------------------------
class DRConvPallas:
    """JAX/Pallas port of DRConv. Parameter shapes mirror the PyTorch module."""

    def __init__(self, in_channels, out_channels, kernel_size=1, stride=1, padding=0,
                 groups=1, bias=True, dilation=1, groups_num=8, num_W=8, *,
                 key, compute_dtype=None, output_dtype=jnp.float32):
        self.in_channels = in_channels
        self.out_channels = out_channels
        self.kernel_size = (kernel_size, kernel_size)
        self.stride = (stride, stride)
        self.padding = (padding, padding)
        self.dilation = (dilation, dilation)
        self.groups_num = groups_num
        self.num_W = num_W
        # bf16 operands by default on v6e/v7x (f32 accumulation), f32 on v5e/unknown.
        self.compute_dtype = compute_dtype if compute_dtype is not None else _default_compute_dtype()
        self.output_dtype = output_dtype
        self.use_unfold = not (self.kernel_size[0] == 1 and self.stride[0] == 1
                               and self.padding[0] == 0 and self.dilation[0] == 1)
        kh, kw = self.kernel_size
        n = in_channels * kh * kw
        bound = math.sqrt(6.0 / n)
        k1, k2 = jax.random.split(key)
        # nn.Parameter(Tensor(O*Cin*kh*kw, num_W)).uniform_(-bound, bound)
        self.weight = jax.random.uniform(
            k1, (out_channels * in_channels * kh * kw, num_W),
            minval=-bound, maxval=bound, dtype=jnp.float32)
        # bias zero-initialized (reset_parameters)
        self.bias = jnp.zeros((out_channels,), jnp.float32) if bias else None
        # routing_fc: Linear(in_channels, groups_num*num_W), weight ~ N(0, 0.01), bias = 0
        self.routing_w = 0.01 * jax.random.normal(
            k2, (groups_num * num_W, in_channels), dtype=jnp.float32)
        self.routing_b = jnp.zeros((groups_num * num_W,), jnp.float32)

    def dynamic_weights(self, inputs):
        """Routing + per-(batch, group) filter generation (small glue, plain JAX)."""
        alpha = 1.0
        B, C, H, W = inputs.shape
        kh, kw = self.kernel_size
        x_se = inputs.reshape(B, C, -1).mean(axis=-1)                               # (B, Cin)
        x_se = 2.0 * jax.nn.sigmoid(
            alpha * (x_se @ self.routing_w.T + self.routing_b)) / self.num_W        # (B, G*num_W)
        w = x_se.reshape(-1, self.num_W) @ self.weight.T                            # (B*G, O*Cunf)
        return w.reshape(B, self.groups_num, self.out_channels,
                         self.in_channels * kh * kw)                                # (B, G, O, Cunf)

    def __call__(self, inputs, mask, Alpha, use_alpha=False, beta=1.0, form="auto"):
        B, C, H, W = inputs.shape
        kh, kw = self.kernel_size
        out_h = (H + 2 * self.padding[0] - self.dilation[0] * (kh - 1) - 1) // self.stride[0] + 1
        out_w = (W + 2 * self.padding[1] - self.dilation[1] * (kw - 1) - 1) // self.stride[1] + 1
        w = self.dynamic_weights(inputs)
        if self.use_unfold:
            # TODO(synk): F.unfold / F.interpolate path (kernel_size > 1) not implemented;
            # this script only exercises the 1x1 / stride-1 / pad-0 configuration.
            raise NotImplementedError("unfold path not implemented")
        x_flat = inputs.reshape(B, self.in_channels * kh * kw, out_h * out_w)
        # Only the routing tensor actually streamed is built / padded / DMA'd.
        if use_alpha:
            route_flat = Alpha.astype(jnp.float32).reshape(B, self.groups_num, out_h * out_w)
        else:
            route_flat = mask.astype(jnp.int32).reshape(B, 1, out_h * out_w)
        out = drconv_deformable_matmul(x_flat, w, route_flat, self.bias, use_alpha, beta,
                                       compute_dtype=self.compute_dtype,
                                       out_dtype=self.output_dtype, form=form)
        return out.reshape(B, self.out_channels, out_h, out_w)


def drconv_reference(mod, inputs, mask, Alpha, use_alpha, beta):
    """Pure-jnp reference of the assumed forward semantics (no Pallas)."""
    B, C, H, W = inputs.shape
    G = mod.groups_num
    w = mod.dynamic_weights(inputs)                                   # (B, G, O, C)
    x = inputs.reshape(B, C, H * W).astype(jnp.float32)
    y = jnp.einsum('bgoc,bcp->bgop', w, x)                            # per-group response
    if use_alpha:
        coef = beta * Alpha.reshape(B, G, H * W).astype(jnp.float32)
    else:
        coef = jax.nn.one_hot(mask.reshape(B, H * W), G, axis=1, dtype=jnp.float32)
    out = jnp.einsum('bgop,bgp->bop', y, coef)
    if mod.bias is not None:
        out = out + mod.bias[None, :, None]
    return out.reshape(B, mod.out_channels, H, W)


if __name__ == "__main__":
    key = jax.random.PRNGKey(0)
    kp, kx, km, ka = jax.random.split(key, 4)

    B, Cin, H, W = 2, 4, 16, 16
    Cout, G, num_W = 8, 8, 8

    x = jax.random.normal(kx, (B, Cin, H, W), dtype=jnp.float32)
    mask = jax.random.randint(km, (B, H, W), 0, G)                          # region ids
    Alpha = jax.nn.softmax(jax.random.normal(ka, (B, G, H, W), dtype=jnp.float32), axis=1)

    # --- Exact f32 compute path, exercising BOTH kernel forms (stacked / folded). ---
    mod = DRConvPallas(Cin, Cout, kernel_size=1, groups_num=G, num_W=num_W, key=kp,
                       compute_dtype=jnp.float32)
    ref_hard = np.asarray(drconv_reference(mod, x, mask, Alpha, False, 1.0))
    ref_soft = np.asarray(drconv_reference(mod, x, mask, Alpha, True, 0.5))
    for form in ("stacked", "folded"):
        out_hard = jax.block_until_ready(mod(x, mask, Alpha, use_alpha=False, form=form))
        out_soft = jax.block_until_ready(mod(x, mask, Alpha, use_alpha=True, beta=0.5, form=form))
        np.testing.assert_allclose(np.asarray(out_hard), ref_hard, rtol=1e-4, atol=1e-4)
        np.testing.assert_allclose(np.asarray(out_soft), ref_soft, rtol=1e-4, atol=1e-4)

    # --- Auto compute dtype (bf16 on v6e/v7x, f32 on v5e), auto form selection. ---
    mod_auto = DRConvPallas(Cin, Cout, kernel_size=1, groups_num=G, num_W=num_W, key=kp)
    if jnp.dtype(mod_auto.compute_dtype) == jnp.dtype(jnp.bfloat16):
        rtol, atol = 5e-2, 5e-2
    else:
        rtol, atol = 1e-4, 1e-4
    out_hard = jax.block_until_ready(mod_auto(x, mask, Alpha, use_alpha=False))
    out_soft = jax.block_until_ready(mod_auto(x, mask, Alpha, use_alpha=True, beta=0.5))
    np.testing.assert_allclose(np.asarray(out_hard), ref_hard, rtol=rtol, atol=atol)
    np.testing.assert_allclose(np.asarray(out_soft), ref_soft, rtol=rtol, atol=atol)

    # --- Explicit bf16-operand path (v6e/v7x MXU rate); f32 accumulation & gating. ---
    mod_bf16 = DRConvPallas(Cin, Cout, kernel_size=1, groups_num=G, num_W=num_W,
                            key=kp, compute_dtype=jnp.bfloat16)
    out_hard_bf16 = jax.block_until_ready(mod_bf16(x, mask, Alpha, use_alpha=False))
    out_soft_bf16 = jax.block_until_ready(mod_bf16(x, mask, Alpha, use_alpha=True, beta=0.5))
    np.testing.assert_allclose(np.asarray(out_hard_bf16), ref_hard, rtol=5e-2, atol=5e-2)
    np.testing.assert_allclose(np.asarray(out_soft_bf16), ref_soft, rtol=5e-2, atol=5e-2)

    print("KERNEL_OK")
</pallas_src>

<mosaic_0001>
module attributes {stable_mosaic.version = 11 : i64} {
  func.func @kernel(%arg0: i32, %arg1: i32, %arg2: memref<1x8x256xf32, #tpu.memory_space<vmem>>, %arg3: memref<1x64x8xf32, #tpu.memory_space<vmem>>, %arg4: memref<1x1x256xi32, #tpu.memory_space<vmem>>, %arg5: memref<1x8x1xf32, #tpu.memory_space<vmem>>, %arg6: memref<1x8x256xf32, #tpu.memory_space<vmem>>) attributes {dimension_semantics = [#tpu.dimension_semantics<parallel>, #tpu.dimension_semantics<parallel>], iteration_bounds = array<i64: 2, 1>, scalar_prefetch = 0 : i64, scratch_operands = 0 : i64, tpu.core_type = #tpu.core_type<tc>, window_params = [{transform_indices = @transform_0, window_bounds = array<i64: 1, 8, 256>}, {transform_indices = @transform_1, window_bounds = array<i64: 1, 64, 8>}, {transform_indices = @transform_2, window_bounds = array<i64: 1, 1, 256>}, {pipeline_mode = #tpu.pipeline_mode<synchronous>, transform_indices = @transform_3, window_bounds = array<i64: 1, 8, 1>}, {transform_indices = @transform_4, window_bounds = array<i64: 1, 8, 256>}]} {
    %c0 = arith.constant 0 : index
    %c0_0 = arith.constant 0 : index
    %c0_1 = arith.constant 0 : index
    %0 = vector.load %arg3[%c0, %c0_0, %c0_1] : memref<1x64x8xf32, #tpu.memory_space<vmem>>, vector<1x64x8xf32>
    %1 = vector.shape_cast %0 : vector<1x64x8xf32> to vector<64x8xf32>
    %c0_2 = arith.constant 0 : index
    %c0_3 = arith.constant 0 : index
    %c0_4 = arith.constant 0 : index
    %2 = vector.load %arg2[%c0_2, %c0_3, %c0_4] : memref<1x8x256xf32, #tpu.memory_space<vmem>>, vector<1x8x256xf32>
    %3 = vector.shape_cast %2 : vector<1x8x256xf32> to vector<8x256xf32>
    %cst = arith.constant dense<0.000000e+00> : vector<64x256xf32>
    %4 = tpu.matmul %1, %3, %cst {dimension_numbers = #tpu.dot_dimension_numbers<[1], [0], [0], [1], [0, 0, 1, 1], [], []>} : vector<64x8xf32>, vector<8x256xf32>, vector<64x256xf32> -> vector<64x256xf32>
    %5 = vector.shape_cast %4 : vector<64x256xf32> to vector<8x8x256xf32>
    %c0_5 = arith.constant 0 : index
    %c0_6 = arith.constant 0 : index
    %c0_7 = arith.constant 0 : index
    %6 = vector.load %arg4[%c0_5, %c0_6, %c0_7] : memref<1x1x256xi32, #tpu.memory_space<vmem>>, vector<1x1x256xi32>
    %7 = vector.shape_cast %6 : vector<1x1x256xi32> to vector<1x256xi32>
    %8 = tpu.iota {dimensions = array<i32: 0>} : vector<8x256xi32>
    %9 = vector.broadcast %7 : vector<1x256xi32> to vector<8x256xi32>
    %10 = arith.cmpi eq, %8, %9 : vector<8x256xi32>
    %11 = arith.extui %10 : vector<8x256xi1> to vector<8x256xi32>
    %12 = arith.sitofp %11 : vector<8x256xi32> to vector<8x256xf32>
    %13 = vector.shape_cast %12 : vector<8x256xf32> to vector<8x1x256xf32>
    %14 = vector.broadcast %13 : vector<8x1x256xf32> to vector<8x8x256xf32>
    %15 = arith.mulf %14, %5 : vector<8x8x256xf32>
    %cst_8 = arith.constant dense<0.000000e+00> : vector<8x256xf32>
    %16 = vector.multi_reduction <add>, %15, %cst_8 [0] : vector<8x8x256xf32> to vector<8x256xf32>
    %c0_9 = arith.constant 0 : index
    %c0_10 = arith.constant 0 : index
    %c0_11 = arith.constant 0 : index
    %17 = vector.load %arg5[%c0_9, %c0_10, %c0_11] : memref<1x8x1xf32, #tpu.memory_space<vmem>>, vector<1x8x1xf32>
    %18 = vector.shape_cast %17 : vector<1x8x1xf32> to vector<8x1xf32>
    %19 = vector.broadcast %18 : vector<8x1xf32> to vector<8x256xf32>
    %20 = arith.addf %16, %19 : vector<8x256xf32>
    %c0_12 = arith.constant 0 : index
    %c0_13 = arith.constant 0 : index
    %c0_14 = arith.constant 0 : index
    %21 = vector.load %arg6[%c0_12, %c0_13, %c0_14] : memref<1x8x256xf32, #tpu.memory_space<vmem>>, vector<1x8x256xf32>
    %22 = vector.shape_cast %21 : vector<1x8x256xf32> to vector<8x256xf32>
    %23 = vector.shape_cast %20 : vector<8x256xf32> to vector<1x8x256xf32>
    tpu.vector_store %arg6[%c0_12, %c0_13, %c0_14], %23 {strides = array<i32>} : memref<1x8x256xf32, #tpu.memory_space<vmem>>, vector<1x8x256xf32>,
    return
  }
  func.func @transform_0(%arg0: i32, %arg1: i32) -> (i32, i32, i32) {
    %c0_i32 = arith.constant 0 : i32
    %c0_i32_0 = arith.constant 0 : i32
    return %arg0, %c0_i32, %arg1 : i32, i32, i32
  }
  func.func @transform_1(%arg0: i32, %arg1: i32) -> (i32, i32, i32) {
    %c0_i32 = arith.constant 0 : i32
    %c0_i32_0 = arith.constant 0 : i32
    %c0_i32_1 = arith.constant 0 : i32
    return %arg0, %c0_i32, %c0_i32_0 : i32, i32, i32
  }
  func.func @transform_2(%arg0: i32, %arg1: i32) -> (i32, i32, i32) {
    %c0_i32 = arith.constant 0 : i32
    %c0_i32_0 = arith.constant 0 : i32
    return %arg0, %c0_i32, %arg1 : i32, i32, i32
  }
  func.func @transform_3(%arg0: i32, %arg1: i32) -> (i32, i32, i32) {
    %c0_i32 = arith.constant 0 : i32
    %c0_i32_0 = arith.constant 0 : i32
    %c0_i32_1 = arith.constant 0 : i32
    %c0_i32_2 = arith.constant 0 : i32
    return %c0_i32, %c0_i32_0, %c0_i32_1 : i32, i32, i32
  }
  func.func @transform_4(%arg0: i32, %arg1: i32) -> (i32, i32, i32) {
    %c0_i32 = arith.constant 0 : i32
    %c0_i32_0 = arith.constant 0 : i32
    return %arg0, %c0_i32, %arg1 : i32, i32, i32
  }
}

</mosaic_0001>

<bundles_post_ra>
// kernel: tpu_custom_call.1
= control target key start
LH: loop header
LB: loop body
LE: loop exit
PB: predicated region body
PF: predicated region fallthrough
CT: control target
= control target key end

     0   :  { %9 = vsyncpa [#allocation3], 0  ;;  %s1092_s0 = inlined_call_operand.vmem [shape: f32[2,8,256], index: 0, kind: input, shape index: {}]   ;;  %s1093_s1 = inlined_call_operand.vmem [shape: f32[2,64,8], index: 1, kind: input, shape index: {}]   ;;  %s1094_s2 = inlined_call_operand.vmem [shape: s32[2,1,256], index: 2, kind: input, shape index: {}]   ;;  %s1095_s3 = inlined_call_operand.vmem [shape: f32[1,8,1], index: 3, kind: input, shape index: {}]   ;;  %s1096_s4 = inlined_call_operand.hbm [shape: f32[2,8,256], index: 4, kind: output, shape index: {}]  }
   0x1   :  { %11 = vsyncpa [#allocation3 + $0x1], 0  ;;  %s936_s15 = smov 0   ;;  %s938_s16 = smov 0  }
   0x2   :  { %s940_s17 = smov 0   ;;  %s942_s18 = smov 0  }
   0x3   :  { %s944_s19 = smov 0   ;;  %s946_s20 = smov 0  }
   0x4 LB: > { %s737_s21 = sadd.s32 4294967295, %s905_s20   ;;  %s738_s22 = sadd.s32 4294967294, %s905_s20   ;;  %s905_s20 = sphi %s946_s20, %s17_s20   ;;  %s901_s19 = sphi %s944_s19, %s1103_s19   ;;  %s897_s18 = sphi %s942_s18, %s1102_s18   ;;  %s893_s17 = sphi %s940_s17, %s1101_s17   ;;  %s889_s16 = sphi %s938_s16, %s1100_s16   ;;  %s885_s15 = sphi %s936_s15, %s1099_s15  }
   0x5   : > { %s29_s23 = sadd.s32 1, %s901_s19  ;;  %s141_s24 = sadd.s32 1, %s893_s17 }
   0x6   : > { %p31_p0 = scmp.ge.s32.totalorder %s29_s23, 2  ;;  %p151_p1 = scmp.ne.s32.totalorder %s893_s17, %s889_s16 }
   0x7   : > { %p152_p2 = scmp.eq.s32.totalorder %s737_s21, 1  ;;  %p157_p3 = scmp.ne.s32.totalorder %s889_s16, %s885_s15 }
   0x8   : > { %s1105_s23 = smov (%p31_p0, %s29_s23), 0  ;;  %p158_p5 = scmp.eq.s32.totalorder %s738_s22, 1 }
   0x9   : > { %p976_p4 = por %p152_p2, %p151_p1  ;;  %s136_s26 = ssub.s32 %s901_s19, %s1105_s23 }
   0xa   : > { %p741_p6 = scmp.ge.s32.totalorder %s905_s20, 1  ;;  %p139_p7 = scmp.eq.s32.totalorder %s136_s26, 0 }
   0xb   : > { %p983_p8 = por %p158_p5, %p157_p3  ;;  %p212_p9 = scmp.lt.s32.totalorder %s905_s20, 3 }
   0xc   : > { %s989_s28 = scalar_select %p139_p7, %s893_s17, %s141_s24  }
   0xd   : > { %p213_p10 = pnand %p741_p6, %p212_p9 }
   0xe   : > { %p256_p11 = scmp.lt.s32.totalorder (!%p213_p10), %s897_s18, 1  ;;  %v607_v0 = vld [vmem:[%s1095_s3] sm:$0xff] (!%p213_p10)  ;;  %v907_v1 = vmov (!%p213_p10), 0.0   ;;  %v908_v2 = vmov (!%p213_p10), 0   ;;  %vm290_vm0 = vcmask (!%p213_p10), 64512   ;;  %v429_v13 = vlaneseq (!%p213_p10)  ;;  %s252_s26 = sand.u32 (!%p213_p10), 1, %s889_s16  }
   0xf   : > { %216 = sbr.rel (%p213_p10) target bundleno = 282 (0x11a), region = 36  ;;  %379 = vmatprep.mubr.f32.mxu0 (!%p213_p10), %v907_v1  ;;  %403 = vmatprep.mubr.f32.mxu1 (!%p213_p10), %v907_v1  ;;  %v909_v20 = vmov (!%p213_p10), 1966171168   ;;  %s742_s29 = sshll.u32 (!%p213_p10), %s252_s26, 4 }
  0x10   : > { %826 = vset.pattern.permute.xlu0 (!%p213_p10), %v908_v2  ;;  %v430_v14 = vshrl.u32 (!%p213_p10), %v429_v13, 7  ;;  %v450_v21 = vunpack.c.l.s4 (!%p213_p10), %v909_v20  ;;  %s765_s30 = sshll.u32 (!%p213_p10), %s897_s18, 8 }
  0x11   : > { %610 = vperm.xlu0 (!%p213_p10), %826, %v607_v0   ;;  %s1045_s9 = scalar_lea.hbm (!%p213_p10), %s1096_s4, %s765_s30 }
  0x12   : > { %v1018_v15 = vsub.s32 (!%p213_p10), 0, %v430_v14  ;;  %v1020_v16 = vsub.s32 (!%p213_p10), 1, %v430_v14  ;;  %v451_v22 = vunpack.c.0.s8 (!%p213_p10), %v450_v21 }
  0x14   : > { %v454_v26 = vsub.s32 (!%p213_p10), %v451_v22, %v430_v14 }
  0x16   : > { %s996_s5 = scalar_select %p256_p11, %s897_s18, 1 }
  0x17   : > { %s910_s18 = smov [#allocation2]  }
  0x18   : > { %s763_s6 = sshll.u32 %s996_s5, 4  ;;  %s764_s7 = sshll.u32 %s996_s5, 6 }
  0x19   : > { %s263_s10 = scalar_lea.vmem %s1092_s0, %s763_s6  ;;  %s269_s13 = scalar_lea.vmem %s1093_s1, %s764_s7 }
  0x1a   : > { %v289_v3 = vld [vmem:[%s263_s10 + $0x8] sm:$0xff]  ;;  %v288_v4 = vld [vmem:[%s263_s10] sm:$0xff]  ;;  %v282_v9 = vld [vmem:[%s269_s13 + $0x10] sm:$0xff]  ;;  %s747_s14 = sshll.u32 %s996_s5, 1  ;;  %s254_s5 = scalar_lea.vmem [#allocation2], %s742_s29 }
  0x1b   : > { %v280_v5 = vld [vmem:[%s269_s13] sm:$0xff]  ;;  %315 = vmatprep.subr.mxu0 %v289_v3  ;;  %766 = vmatprep.subr.mxu1 %v289_v3  ;;  %v281_v7 = vld [vmem:[%s269_s13 + $0x8] sm:$0xff]  ;;  %v286_v10 = vld [vmem:[%s269_s13 + $0x30] sm:$0xff]  ;;  %s277_s24 = scalar_lea.vmem %s1094_s2, %s747_s14  ;;  %s634_s6 = sshll.u32 %s254_s5, 4  ;;  %s1047_s6 = int_to_ptr.vmem [resolvable:$true] %s634_s6 }
  0x1c   : > { %v284_v6 = vld [vmem:[%s269_s13 + $0x20] sm:$0xff]  ;;  %316 = vmatpush1.msra.mxu0 %v288_v4  ;;  %767 = vmatpush1.msra.mxu1 %v288_v4  ;;  %v285_v8 = vld [vmem:[%s269_s13 + $0x28] sm:$0xff]  ;;  %v283_v11 = vld [vmem:[%s269_s13 + $0x18] sm:$0xff]  ;;  %s618_s10 = scalar_lea.sflag [#allocation3], %s252_s26  ;;  %s827_s11 = scalar_lea.vmem %s1047_s6, 256 }
  0x1d   : > { %748 = vmatmul.mubr.msk.f32.vlgmr.msra.gmra.mrb[0].mxu0 %vm290_vm0, %v280_v5  ;;  %752 = vmatmul.mubr.msk.f32.vlgmr.msra.gmra.mrb[0].mxu1 %vm290_vm0, %v284_v6  ;;  %v287_v12 = vld [vmem:[%s269_s13 + $0x38] sm:$0xff]  ;;  %v428_v17 = vld [vmem:[%s277_s24] sm:$0x3]  ;;  %p828_p12 = scmp.ne.s32.totalorder %s1047_s6, %s827_s11  ;;  %s831_s12 = sshll.u32 %s910_s18, 4  ;;  %s832_s12 = int_to_ptr.vmem [resolvable:$false] %s831_s12 }
  0x1e   : > { %385 = vmatprep.mubr.f32.mxu0 %v907_v1  ;;  %409 = vmatprep.mubr.f32.mxu1 %v907_v1  ;;  %v434_v18 = vrot.slane %v428_v17, %v1018_v15  ;;  %v438_v19 = vrot.slane %v428_v17, %v1020_v16  ;;  %s833_s13 = scalar_lea.vmem %s832_s12, 512  ;;  %p834_p1 = scmp.lt.s32.totalorder %s1047_s6, %s832_s12 }
  0x1f   : > { %p829_p13 = pnand %p828_p12, %p976_p4  ;;  %p835_p2 = scmp.lt.s32.totalorder %s833_s13, %s827_s11 }
  0x20   : > { %vm439_vm1 = vcmp.eq.s32.totalorder %v430_v14, %v434_v18  ;;  %vm440_vm2 = vcmp.eq.s32.totalorder %v430_v14, %v438_v19 }
  0x21   : > { %749 = vmatmul.mubr.msk.f32.gmra.mrb[2].mxu0 %vm290_vm0, %v281_v7  ;;  %753 = vmatmul.mubr.msk.f32.gmra.mrb[2].mxu1 %vm290_vm0, %v285_v8  ;;  %v756_v23 = vsel %vm439_vm1, 1.0, %v907_v1  ;;  %v757_v24 = vsel %vm440_vm2, 1.0, %v907_v1  ;;  %p830_p0 = pneg %p829_p13  ;;  %p836_p3 = por %p835_p2, %p834_p1 }
  0x22   : > { %391 = vmatprep.mubr.f32.mxu0 %v907_v1  ;;  %415 = vmatprep.mubr.f32.mxu1 %v907_v1  ;;  %v447_v25 = vcombine.low %v756_v23, %v757_v24  ;;  %v448_v27 = vcombine.high %v756_v23, %v757_v24 }
  0x23   : > { %p837_p5 = pnand %p836_p3, %p830_p0 }
  0x24   : > { %v455_v28 = vrot.slane %v447_v25, %v454_v26  ;;  %v462_v29 = vrot.slane %v448_v27, %v454_v26 }
  0x25   : > { %750 = vmatmul.mubr.msk.f32.gmra.mrb[4].mxu0 %vm290_vm0, %v282_v9  ;;  %754 = vmatmul.mubr.msk.f32.gmra.mrb[4].mxu1 %vm290_vm0, %v286_v10 }
  0x26   : > { %397 = vmatprep.mubr.f32.mxu0 %v907_v1  ;;  %421 = vmatprep.mubr.f32.mxu1 %v907_v1  ;;  %v463_v30 = vcombine.high %v455_v28, %v455_v28  ;;  %v471_v31 = vrot.slane %v455_v28, %v454_v26  ;;  %v478_v32 = vrot.slane %v462_v29, %v454_v26 }
  0x27   : > { %v464_v33 = vcombine.high %v462_v29, %v462_v29 }
  0x28   : > { %v485_v34 = vrot.slane %v463_v30, %v454_v26  ;;  %v500_v35 = vrot.slane %v471_v31, %v1018_v15  ;;  %v532_v36 = vrot.slane %v478_v32, %v1018_v15  ;;  %v504_v38 = vrot.slane %v471_v31, %v1020_v16 }
  0x29   : > { %751 = vmatmul.mubr.msk.f32.gmra.mrb[6].mxu0 %vm290_vm0, %v283_v11  ;;  %755 = vmatmul.mubr.msk.f32.gmra.mrb[6].mxu1 %vm290_vm0, %v287_v12  ;;  %v492_v37 = vrot.slane %v464_v33, %v454_v26  ;;  %v536_v39 = vrot.slane %v478_v32, %v1020_v16  ;;  %v493_v43 = vcombine.high %v471_v31, %v471_v31 }
  0x2a   : > { %v508_v41 = vrot.slane %v485_v34, %v1018_v15  ;;  %v494_v49 = vcombine.high %v478_v32, %v478_v32  ;;  %v512_v51 = vrot.slane %v485_v34, %v1020_v16  ;;  %v495_v57 = vcombine.high %v485_v34, %v485_v34 }
  0x2b   : > { %v540_v48 = vrot.slane %v492_v37, %v1018_v15  ;;  %v544_v53 = vrot.slane %v492_v37, %v1020_v16  ;;  %v516_v55 = vrot.slane %v493_v43, %v1018_v15  ;;  %v496_v63 = vcombine.high %v492_v37, %v492_v37 }
  0x2c   : > { %v548_v62 = vrot.slane %v494_v49, %v1018_v15  ;;  %v520_v1 = vrot.slane %v493_v43, %v1020_v16  ;;  %v552_v3 = vrot.slane %v494_v49, %v1020_v16  ;;  %v524_v10 = vrot.slane %v495_v57, %v1018_v15 }
  0x2d   : > { %v556_v13 = vrot.slane %v496_v63, %v1018_v15  ;;  %v528_v17 = vrot.slane %v495_v57, %v1020_v16  ;;  %v560_v19 = vrot.slane %v496_v63, %v1020_v16 }
  0xf0   : > { %v381_v40 = vpop.f32.mrb[0].mxu0  ;;  %v405_v42 = vpop.f32.mrb[0].mxu1 }
  0xf1   : > { %v577_v44 = vmul.f32 %v500_v35, %v381_v40  ;;  %v383_v45 = vpop.f32.mrb[1].mxu0  ;;  %v585_v46 = vmul.f32 %v532_v36, %v405_v42  ;;  %v407_v47 = vpop.f32.mrb[1].mxu1 }
  0xf2   : > { %v578_v50 = vmul.f32 %v504_v38, %v383_v45  ;;  %v586_v52 = vmul.f32 %v536_v39, %v407_v47  ;;  %v611_v36 = vpop.permute.xlu0 %610 }
  0xf4   : > { %v387_v54 = vpop.f32.mrb[2].mxu0  ;;  %v411_v56 = vpop.f32.mrb[2].mxu1 }
  0xf5   : > { %v579_v58 = vmul.f32 %v508_v41, %v387_v54  ;;  %v389_v59 = vpop.f32.mrb[3].mxu0  ;;  %v587_v60 = vmul.f32 %v540_v48, %v411_v56  ;;  %v413_v61 = vpop.f32.mrb[3].mxu1 }
  0xf6   : > { %v580_v0 = vmul.f32 %v512_v51, %v389_v59  ;;  %v588_v2 = vmul.f32 %v544_v53, %v413_v61 }
  0xf7   : > { %v593_v4 = vadd.f32 %v579_v58, %v577_v44 }
  0xf8   : > { %v600_v5 = vadd.f32 %v580_v0, %v578_v50  ;;  %v393_v6 = vpop.f32.mrb[4].mxu0  ;;  %v417_v7 = vpop.f32.mrb[4].mxu1 }
  0xf9   : > { %v581_v8 = vmul.f32 %v516_v55, %v393_v6  ;;  %v395_v9 = vpop.f32.mrb[5].mxu0  ;;  %v589_v11 = vmul.f32 %v548_v62, %v417_v7  ;;  %v419_v12 = vpop.f32.mrb[5].mxu1 }
  0xfa   : > { %v582_v14 = vmul.f32 %v520_v1, %v395_v9  ;;  %v590_v18 = vmul.f32 %v552_v3, %v419_v12 }
  0xfb   : > { %v594_v20 = vadd.f32 %v593_v4, %v581_v8 }
  0xfc   : > { %v601_v21 = vadd.f32 %v600_v5, %v582_v14  ;;  %v399_v22 = vpop.f32.mrb[6].mxu0  ;;  %v423_v23 = vpop.f32.mrb[6].mxu1 }
  0xfd   : > { %v583_v24 = vmul.f32 %v524_v10, %v399_v22  ;;  %v401_v25 = vpop.f32.mrb[7].mxu0  ;;  %v591_v26 = vmul.f32 %v556_v13, %v423_v23  ;;  %v425_v27 = vpop.f32.mrb[7].mxu1 }
  0xfe   : > { %v584_v28 = vmul.f32 %v528_v17, %v401_v25  ;;  %v592_v29 = vmul.f32 %v560_v19, %v425_v27 }
  0xff   : > { %v595_v30 = vadd.f32 %v594_v20, %v583_v24 }
 0x100   : > { %v602_v15 = vadd.f32 %v601_v21, %v584_v28 }
 0x101   : > { %v596_v31 = vadd.f32 %v595_v30, %v585_v46 }
 0x102   : > { %v603_v32 = vadd.f32 %v602_v15, %v586_v52 }
 0x103   : > { %v597_v33 = vadd.f32 %v596_v31, %v587_v60 }
 0x104   : > { %v604_v34 = vadd.f32 %v603_v32, %v588_v2 }
 0x105   : > { %v598_v16 = vadd.f32 %v597_v33, %v589_v11 }
 0x106   : > { %v605_v35 = vadd.f32 %v604_v34, %v590_v18 }
 0x107   : > { %v599_v37 = vadd.f32 %v598_v16, %v591_v26 }
 0x108   : > { %v606_v38 = vadd.f32 %v605_v35, %v592_v29 }
 0x109   : > { %v613_v39 = vadd.f32 %v611_v36, %v599_v37 }
 0x10a   : > { %v614_v40 = vadd.f32 %v611_v36, %v606_v38 }
 0x10b   : > { %615 = vst [vmem:[%s254_s5] sm:$0xff] %v613_v39 }
 0x10c   : > { %616 = vst [vmem:[%s254_s5 + $0x8] sm:$0xff] %v614_v40 }
 0x10d   : > { %840 = shalt.err (!%p837_p5)
}
 0x10e   : > { %s841_s14 = scalar_lea.hbm %s1045_s9, 256  ;;  %s845_s24 = scalar_lea.hbm %s1096_s4, 512 }
 0x10f   : > { %p842_p6 = scmp.ne.s32.totalorder %s1045_s9, %s841_s14  ;;  %p846_p10 = scmp.lt.u32.totalorder %s1045_s9, %s1096_s4 }
 0x110   : > { %p847_p11 = scmp.lt.u32.totalorder %s845_s24, %s841_s14  ;;  %p849_p13 = scmp.lt.u32.totalorder %s841_s14, %s1045_s9 }
 0x111   : > { %p843_p7 = pnand %p842_p6, %p976_p4 }
 0x112   : > { %p848_p12 = por %p847_p11, %p846_p10 }
 0x113   : > { %p844_p9 = pneg %p843_p7 }
 0x114   : > { %p850_p0 = por %p849_p13, %p848_p12 }
 0x116   : > { %p851_p1 = pnand %p850_p0, %p844_p9 }
 0x118   : > { %854 = shalt.err (!%p851_p1)
}
 0x119   : > { %768 = dma.vmem_to_hbm [thread:$0]  (%p976_p4), %s1047_s6, 256, %s1045_s9, %s618_s10  }
 0x11a PF: > { %p774_p2 = scmp.ge.s32.totalorder %s905_s20, 2  ;;  %s646_s30 = sand.u32 1, %s885_s15  }
 0x11b   : > { %s647_s5 = scalar_lea.sflag [#allocation3], %s646_s30 }
 0x11c   : > { %p771_p3 = pnand %p774_p2, %p983_p8 }
 0x11e   : > { %880 = dma.done.wait (!%p771_p3), %s647_s5, 256  }
 0x11f   : > { %882 = vsyncadd (!%p771_p3), %s647_s5, 4294967040  ;;  %s17_s20 = sadd.s32 1, %s905_s20   ;;  %s1099_s15 = smov %s889_s16 }
 0x120   : > { %p14_p5 = scmp.ge.s32.totalorder %s17_s20, 4   ;;  %s1100_s16 = smov %s893_s17 }
 0x121   : > { %s1101_s17 = smov %s989_s28  ;;  %s1102_s18 = smov %s901_s19 }
 0x122   : > { %s1103_s19 = smov %s1105_s23  ;;  %16 = sbr.rel (!%p14_p5) target bundleno = 4 (0x4), region = 77 }
 0x129   :  { %652 = vsyncpa [#allocation3], 1 }
 0x12a   :  { %654 = vsyncpa [#allocation3 + $0x1], 1 }

</bundles_post_ra>
